<compile_context>
chip_gen: v5e
topology: v5e:2x2
jax: 0.10.0
libtpu: 0.0.40
codegen_flags: <defaults>
</compile_context>

<pallas_src>
import functools
import math

import jax
import jax.numpy as jnp
import numpy as np
from jax.experimental import pallas as pl
from jax.experimental.pallas import tpu as pltpu


# ----------------------------- Pallas kernel --------------------------------
def _layer_norm(v, g, b, eps=1e-5):
    mu = jnp.mean(v, axis=-1, keepdims=True)
    var = jnp.mean(jnp.square(v - mu), axis=-1, keepdims=True)
    return (v - mu) * jax.lax.rsqrt(var + eps) * g + b


def _encoder_layer_kernel(
    x_ref,              # (1, N, D) f32  -- one batch element per grid step
    g1_ref, b1_ref,     # (1, D) f32     LayerNorm-1 gamma/beta
    wqkv_ref,           # (D, 3D) bf16   [Wq | Wk | Wv], head-major column blocks
    wo_ref,             # (D, D) bf16    rows = heads concatenated (head-major)
    g2_ref, b2_ref,     # (1, D) f32     LayerNorm-2 gamma/beta
    w1_ref, bf1_ref,    # (D, FF) bf16, (1, FF) f32
    w2_ref, bf2_ref,    # (FF, D) bf16, (1, D) f32
    out_ref,            # (1, N, D) f32
    *, n_heads: int,
):
    _, N, D = x_ref.shape
    H = n_heads
    kd = D // H
    scale = 1.0 / math.sqrt(kd)

    x = x_ref[0]                                            # (N, D) f32, residual h0

    # ---- pre-norm 1 (f32) ----
    h = _layer_norm(x, g1_ref[...], b1_ref[...])            # (N, D)

    # ---- fused Q/K/V projection: single lane-dense bf16 MXU dot ----
    qkv = jnp.dot(h.astype(jnp.bfloat16), wqkv_ref[...],
                  preferred_element_type=jnp.float32)       # (N, 3D) f32

    # ---- per-head attention (static lane slices of the fused projection).
    # NOTE: for production-sized H, move heads onto a grid axis / batched
    # dot_general; at small H the unrolled body is tiny since the big matmuls
    # above/below are already fused over heads.
    heads = []
    for hd in range(H):
        q = qkv[:, hd * kd:(hd + 1) * kd]                   # (N, kd)
        k = qkv[:, D + hd * kd:D + (hd + 1) * kd]           # (N, kd)
        v = qkv[:, 2 * D + hd * kd:2 * D + (hd + 1) * kd]   # (N, kd)
        # contract kd of q and k directly -- no explicit k transpose
        s = scale * jax.lax.dot_general(
            q.astype(jnp.bfloat16), k.astype(jnp.bfloat16),
            dimension_numbers=(((1,), (1,)), ((), ())),
            preferred_element_type=jnp.float32)             # (N, N) f32
        s = s - jnp.max(s, axis=-1, keepdims=True)
        e = jnp.exp(s)
        p = e * pl.reciprocal(jnp.sum(e, axis=-1, keepdims=True), approx=True)
        heads.append(jnp.dot(p.astype(jnp.bfloat16), v.astype(jnp.bfloat16),
                             preferred_element_type=jnp.float32))   # (N, kd)

    # concat heads on the lane axis -> ONE fused output projection (N,D)@(D,D)
    heads_cat = jnp.concatenate(heads, axis=-1)             # (N, D) f32
    attn = jnp.dot(heads_cat.astype(jnp.bfloat16), wo_ref[...],
                   preferred_element_type=jnp.float32)      # (N, D) f32

    # ---- residual 1 (fused on values, no scratch round-trip) ----
    h_res = attn + x

    # ---- pre-norm 2 + feed-forward + residual 2 ----
    h2 = _layer_norm(h_res, g2_ref[...], b2_ref[...])
    ff = jnp.dot(h2.astype(jnp.bfloat16), w1_ref[...],
                 preferred_element_type=jnp.float32) + bf1_ref[...]
    ff = jnp.maximum(ff, 0.0)
    ff = jnp.dot(ff.astype(jnp.bfloat16), w2_ref[...],
                 preferred_element_type=jnp.float32) + bf2_ref[...]

    out_ref[0] = (ff + h_res).astype(out_ref.dtype)


# ------------------------------- wrapper -------------------------------------
def encoder_layer(x, params):
    """x: (B, N, D) float32.  params: dict of weights (see init_params)."""
    B, N, D = x.shape
    H = params["w_query"].shape[0]
    kd = D // H
    FF = params["fc1_w"].shape[1]

    # fuse Q/K/V weights into a single lane-dense (D, 3D) matrix, bf16-resident
    def heads_to_cols(w):              # (H, D, kd) -> (D, H*kd), head-major cols
        return jnp.transpose(w, (1, 0, 2)).reshape(D, H * kd)

    wqkv = jnp.concatenate(
        [heads_to_cols(params["w_query"]),
         heads_to_cols(params["w_key"]),
         heads_to_cols(params["w_value"])], axis=1).astype(jnp.bfloat16)  # (D, 3D)
    wo = params["w_out"].reshape(H * kd, D).astype(jnp.bfloat16)          # (D, D)
    w1 = params["fc1_w"].astype(jnp.bfloat16)                             # (D, FF)
    w2 = params["fc2_w"].astype(jnp.bfloat16)                             # (FF, D)

    args = (
        x.astype(jnp.float32),
        params["ln1_g"], params["ln1_b"],
        wqkv, wo,
        params["ln2_g"], params["ln2_b"],
        w1, params["fc1_b"], w2, params["fc2_b"],
    )

    def whole(a):  # whole-array block, constant across the batch grid
        return pl.BlockSpec(a.shape, lambda b: (0,) * a.ndim)

    in_specs = [pl.BlockSpec((1, N, D), lambda b: (b, 0, 0))]
    in_specs += [whole(a) for a in args[1:]]
    out_specs = pl.BlockSpec((1, N, D), lambda b: (b, 0, 0))

    flops = int(B * (2 * N * D * 3 * D            # fused QKV projection
                     + H * (2 * N * N * kd) * 2   # scores + attn @ V
                     + 2 * N * D * D              # output projection
                     + 2 * N * D * FF             # fc1
                     + 2 * N * FF * D))           # fc2
    transcendentals = int(B * (H * N * N + 2 * N))
    bytes_accessed = int(
        2 * B * N * D * 4
        + (wqkv.size + wo.size + w1.size + w2.size) * 2
        + (params["ln1_g"].size + params["ln1_b"].size
           + params["ln2_g"].size + params["ln2_b"].size
           + params["fc1_b"].size + params["fc2_b"].size) * 4)

    kernel = functools.partial(_encoder_layer_kernel, n_heads=H)
    return pl.pallas_call(
        kernel,
        out_shape=jax.ShapeDtypeStruct((B, N, D), jnp.float32),
        grid=(B,),
        in_specs=in_specs,
        out_specs=out_specs,
        compiler_params=pltpu.CompilerParams(
            dimension_semantics=("parallel",),
            vmem_limit_bytes=32 * 1024 * 1024),
        cost_estimate=pl.CostEstimate(flops=flops,
                                      transcendentals=transcendentals,
                                      bytes_accessed=bytes_accessed),
    )(*args)


# ----------------------------- parameter init -------------------------------
def init_params(key, embedding_dim, n_heads, ff_dim=512):
    D, H = embedding_dim, n_heads
    kd = D // H
    ks = jax.random.split(key, 8)

    def unif(k, shape, stdv):
        return jax.random.uniform(k, shape, jnp.float32, -stdv, stdv)

    return {
        # MultiHeadAttention params (torch init: uniform(+-1/sqrt(size(-1))))
        "w_query": unif(ks[0], (H, D, kd), 1.0 / math.sqrt(kd)),
        "w_key":   unif(ks[1], (H, D, kd), 1.0 / math.sqrt(kd)),
        "w_value": unif(ks[2], (H, D, kd), 1.0 / math.sqrt(kd)),
        "w_out":   unif(ks[3], (H, kd, D), 1.0 / math.sqrt(D)),
        # LayerNorms (torch default: gamma=1, beta=0)
        "ln1_g": jnp.ones((1, D), jnp.float32),
        "ln1_b": jnp.zeros((1, D), jnp.float32),
        "ln2_g": jnp.ones((1, D), jnp.float32),
        "ln2_b": jnp.zeros((1, D), jnp.float32),
        # FeedForward Linear layers, stored as (in, out) so y = x @ W + b
        "fc1_w": unif(ks[4], (D, ff_dim), 1.0 / math.sqrt(D)),
        "fc1_b": unif(ks[5], (1, ff_dim), 1.0 / math.sqrt(D)),
        "fc2_w": unif(ks[6], (ff_dim, D), 1.0 / math.sqrt(ff_dim)),
        "fc2_b": unif(ks[7], (1, D), 1.0 / math.sqrt(ff_dim)),
    }


# ----------------------------- pure-JAX reference ---------------------------
def encoder_layer_ref(x, p):
    B, N, D = x.shape
    H = p["w_query"].shape[0]
    kd = D // H

    def ln(v, g, b):
        mu = v.mean(-1, keepdims=True)
        var = ((v - mu) ** 2).mean(-1, keepdims=True)
        return (v - mu) / jnp.sqrt(var + 1e-5) * g + b

    h0 = x
    h = ln(x.reshape(-1, D), p["ln1_g"], p["ln1_b"])           # (BN, D)
    Q = jnp.einsum("nd,hdk->hnk", h, p["w_query"]).reshape(H, B, N, kd)
    K = jnp.einsum("nd,hdk->hnk", h, p["w_key"]).reshape(H, B, N, kd)
    V = jnp.einsum("nd,hdk->hnk", h, p["w_value"]).reshape(H, B, N, kd)
    U = (1.0 / math.sqrt(kd)) * jnp.einsum("hbnk,hbmk->hbnm", Q, K)
    attn = jax.nn.softmax(U, axis=-1)
    heads = jnp.einsum("hbnm,hbmv->hbnv", attn, V)              # (H,B,N,kd)
    out = jnp.einsum("hbnv,hvd->bnd", heads, p["w_out"])        # (B,N,D)
    h = out + h0
    h1 = h
    h2 = ln(h.reshape(-1, D), p["ln2_g"], p["ln2_b"])
    ff = jnp.maximum(h2 @ p["fc1_w"] + p["fc1_b"], 0.0)
    ff = ff @ p["fc2_w"] + p["fc2_b"]
    return ff.reshape(B, N, D) + h1


# ----------------------------------- main ------------------------------------
if __name__ == "__main__":
    B, N, D, H = 2, 8, 32, 4

    key = jax.random.PRNGKey(0)
    k_x, k_p = jax.random.split(key)
    x = jax.random.normal(k_x, (B, N, D), jnp.float32)
    params = init_params(k_p, D, H)

    out = encoder_layer(x, params)
    out = jax.block_until_ready(out)

    ref = encoder_layer_ref(x, params)
    # bf16 MXU inputs + approx-reciprocal softmax -> loosened tolerance
    np.testing.assert_allclose(np.asarray(out), np.asarray(ref), rtol=5e-2, atol=5e-2)

    print("KERNEL_OK")
</pallas_src>

<mosaic_0001>
module attributes {stable_mosaic.version = 11 : i64} {
  func.func @_encoder_layer_kernel(%arg0: i32, %arg1: memref<1x8x32xf32, #tpu.memory_space<vmem>>, %arg2: memref<1x32xf32, #tpu.memory_space<vmem>>, %arg3: memref<1x32xf32, #tpu.memory_space<vmem>>, %arg4: memref<32x96xbf16, #tpu.memory_space<vmem>>, %arg5: memref<32x32xbf16, #tpu.memory_space<vmem>>, %arg6: memref<1x32xf32, #tpu.memory_space<vmem>>, %arg7: memref<1x32xf32, #tpu.memory_space<vmem>>, %arg8: memref<32x512xbf16, #tpu.memory_space<vmem>>, %arg9: memref<1x512xf32, #tpu.memory_space<vmem>>, %arg10: memref<512x32xbf16, #tpu.memory_space<vmem>>, %arg11: memref<1x32xf32, #tpu.memory_space<vmem>>, %arg12: memref<1x8x32xf32, #tpu.memory_space<vmem>>) attributes {dimension_semantics = [#tpu.dimension_semantics<parallel>], iteration_bounds = array<i64: 2>, scalar_prefetch = 0 : i64, scratch_operands = 0 : i64, tpu.core_type = #tpu.core_type<tc>, window_params = [{transform_indices = @transform_0, window_bounds = array<i64: 1, 8, 32>}, {pipeline_mode = #tpu.pipeline_mode<synchronous>, transform_indices = @transform_1, window_bounds = array<i64: 1, 32>}, {pipeline_mode = #tpu.pipeline_mode<synchronous>, transform_indices = @transform_2, window_bounds = array<i64: 1, 32>}, {pipeline_mode = #tpu.pipeline_mode<synchronous>, transform_indices = @transform_3, window_bounds = array<i64: 32, 96>}, {pipeline_mode = #tpu.pipeline_mode<synchronous>, transform_indices = @transform_4, window_bounds = array<i64: 32, 32>}, {pipeline_mode = #tpu.pipeline_mode<synchronous>, transform_indices = @transform_5, window_bounds = array<i64: 1, 32>}, {pipeline_mode = #tpu.pipeline_mode<synchronous>, transform_indices = @transform_6, window_bounds = array<i64: 1, 32>}, {pipeline_mode = #tpu.pipeline_mode<synchronous>, transform_indices = @transform_7, window_bounds = array<i64: 32, 512>}, {pipeline_mode = #tpu.pipeline_mode<synchronous>, transform_indices = @transform_8, window_bounds = array<i64: 1, 512>}, {pipeline_mode = #tpu.pipeline_mode<synchronous>, transform_indices = @transform_9, window_bounds = array<i64: 512, 32>}, {pipeline_mode = #tpu.pipeline_mode<synchronous>, transform_indices = @transform_10, window_bounds = array<i64: 1, 32>}, {transform_indices = @transform_11, window_bounds = array<i64: 1, 8, 32>}]} {
    %c0 = arith.constant 0 : index
    %c0_0 = arith.constant 0 : index
    %c0_1 = arith.constant 0 : index
    %0 = vector.load %arg1[%c0, %c0_0, %c0_1] : memref<1x8x32xf32, #tpu.memory_space<vmem>>, vector<1x8x32xf32>
    %1 = vector.shape_cast %0 : vector<1x8x32xf32> to vector<8x32xf32>
    %c0_2 = arith.constant 0 : index
    %c0_3 = arith.constant 0 : index
    %2 = vector.load %arg2[%c0_2, %c0_3] : memref<1x32xf32, #tpu.memory_space<vmem>>, vector<1x32xf32>
    %c0_4 = arith.constant 0 : index
    %c0_5 = arith.constant 0 : index
    %3 = vector.load %arg3[%c0_4, %c0_5] : memref<1x32xf32, #tpu.memory_space<vmem>>, vector<1x32xf32>
    %cst = arith.constant dense<0.000000e+00> : vector<8xf32>
    %4 = vector.multi_reduction <add>, %1, %cst [1] : vector<8x32xf32> to vector<8xf32>
    %5 = vector.shape_cast %4 : vector<8xf32> to vector<8x1xf32>
    %cst_6 = arith.constant 3.200000e+01 : f32
    %6 = vector.broadcast %cst_6 : f32 to vector<8x1xf32>
    %7 = arith.divf %5, %6 : vector<8x1xf32>
    %8 = vector.broadcast %7 : vector<8x1xf32> to vector<8x32xf32>
    %9 = arith.subf %1, %8 : vector<8x32xf32>
    %10 = arith.mulf %9, %9 : vector<8x32xf32>
    %cst_7 = arith.constant dense<0.000000e+00> : vector<8xf32>
    %11 = vector.multi_reduction <add>, %10, %cst_7 [1] : vector<8x32xf32> to vector<8xf32>
    %12 = vector.shape_cast %11 : vector<8xf32> to vector<8x1xf32>
    %cst_8 = arith.constant 3.200000e+01 : f32
    %13 = vector.broadcast %cst_8 : f32 to vector<8x1xf32>
    %14 = arith.divf %12, %13 : vector<8x1xf32>
    %15 = vector.broadcast %7 : vector<8x1xf32> to vector<8x32xf32>
    %16 = arith.subf %1, %15 : vector<8x32xf32>
    %cst_9 = arith.constant 9.99999974E-6 : f32
    %17 = vector.broadcast %cst_9 : f32 to vector<8x1xf32>
    %18 = arith.addf %14, %17 : vector<8x1xf32>
    %19 = math.rsqrt %18 : vector<8x1xf32>
    %20 = vector.broadcast %19 : vector<8x1xf32> to vector<8x32xf32>
    %21 = arith.mulf %16, %20 : vector<8x32xf32>
    %22 = vector.broadcast %2 : vector<1x32xf32> to vector<8x32xf32>
    %23 = arith.mulf %21, %22 : vector<8x32xf32>
    %24 = vector.broadcast %3 : vector<1x32xf32> to vector<8x32xf32>
    %25 = arith.addf %23, %24 : vector<8x32xf32>
    %26 = arith.truncf %25 : vector<8x32xf32> to vector<8x32xbf16>
    %c0_10 = arith.constant 0 : index
    %c0_11 = arith.constant 0 : index
    %27 = vector.load %arg4[%c0_10, %c0_11] : memref<32x96xbf16, #tpu.memory_space<vmem>>, vector<32x96xbf16>
    %cst_12 = arith.constant dense<0.000000e+00> : vector<8x96xf32>
    %28 = tpu.matmul %26, %27, %cst_12 {dimension_numbers = #tpu.dot_dimension_numbers<[1], [0], [0], [1], [0, 0, 1, 1], [], []>} : vector<8x32xbf16>, vector<32x96xbf16>, vector<8x96xf32> -> vector<8x96xf32>
    %29 = vector.extract_strided_slice %28 {offsets = [0, 0], sizes = [8, 8], strides = [1, 1]} : vector<8x96xf32> to vector<8x8xf32>
    %30 = vector.extract_strided_slice %28 {offsets = [0, 32], sizes = [8, 8], strides = [1, 1]} : vector<8x96xf32> to vector<8x8xf32>
    %31 = vector.extract_strided_slice %28 {offsets = [0, 64], sizes = [8, 8], strides = [1, 1]} : vector<8x96xf32> to vector<8x8xf32>
    %32 = arith.truncf %29 : vector<8x8xf32> to vector<8x8xbf16>
    %33 = arith.truncf %30 : vector<8x8xf32> to vector<8x8xbf16>
    %cst_13 = arith.constant dense<0.000000e+00> : vector<8x8xf32>
    %34 = tpu.matmul %32, %33, %cst_13 {dimension_numbers = #tpu.dot_dimension_numbers<[1], [1], [0], [0], [0, 0, 1, 0], [], []>} : vector<8x8xbf16>, vector<8x8xbf16>, vector<8x8xf32> -> vector<8x8xf32>
    %cst_14 = arith.constant 0.353553385 : f32
    %35 = vector.broadcast %cst_14 : f32 to vector<8x8xf32>
    %36 = arith.mulf %35, %34 : vector<8x8xf32>
    %cst_15 = arith.constant dense<0xFF800000> : vector<8xf32>
    %37 = vector.multi_reduction <maximumf>, %36, %cst_15 [1] : vector<8x8xf32> to vector<8xf32>
    %38 = vector.shape_cast %37 : vector<8xf32> to vector<8x1xf32>
    %39 = vector.broadcast %38 : vector<8x1xf32> to vector<8x8xf32>
    %40 = arith.subf %36, %39 : vector<8x8xf32>
    %41 = math.exp %40 : vector<8x8xf32>
    %cst_16 = arith.constant dense<0.000000e+00> : vector<8xf32>
    %42 = vector.multi_reduction <add>, %41, %cst_16 [1] : vector<8x8xf32> to vector<8xf32>
    %43 = vector.shape_cast %42 : vector<8xf32> to vector<8x1xf32>
    %44 = tpu.reciprocal %43 {approx = true} : vector<8x1xf32> -> vector<8x1xf32>
    %45 = vector.broadcast %44 : vector<8x1xf32> to vector<8x8xf32>
    %46 = arith.mulf %41, %45 : vector<8x8xf32>
    %47 = arith.truncf %46 : vector<8x8xf32> to vector<8x8xbf16>
    %48 = arith.truncf %31 : vector<8x8xf32> to vector<8x8xbf16>
    %cst_17 = arith.constant dense<0.000000e+00> : vector<8x8xf32>
    %49 = tpu.matmul %47, %48, %cst_17 {dimension_numbers = #tpu.dot_dimension_numbers<[1], [0], [0], [1], [0, 0, 1, 1], [], []>} : vector<8x8xbf16>, vector<8x8xbf16>, vector<8x8xf32> -> vector<8x8xf32>
    %50 = vector.extract_strided_slice %28 {offsets = [0, 8], sizes = [8, 8], strides = [1, 1]} : vector<8x96xf32> to vector<8x8xf32>
    %51 = vector.extract_strided_slice %28 {offsets = [0, 40], sizes = [8, 8], strides = [1, 1]} : vector<8x96xf32> to vector<8x8xf32>
    %52 = vector.extract_strided_slice %28 {offsets = [0, 72], sizes = [8, 8], strides = [1, 1]} : vector<8x96xf32> to vector<8x8xf32>
    %53 = arith.truncf %50 : vector<8x8xf32> to vector<8x8xbf16>
    %54 = arith.truncf %51 : vector<8x8xf32> to vector<8x8xbf16>
    %cst_18 = arith.constant dense<0.000000e+00> : vector<8x8xf32>
    %55 = tpu.matmul %53, %54, %cst_18 {dimension_numbers = #tpu.dot_dimension_numbers<[1], [1], [0], [0], [0, 0, 1, 0], [], []>} : vector<8x8xbf16>, vector<8x8xbf16>, vector<8x8xf32> -> vector<8x8xf32>
    %cst_19 = arith.constant 0.353553385 : f32
    %56 = vector.broadcast %cst_19 : f32 to vector<8x8xf32>
    %57 = arith.mulf %56, %55 : vector<8x8xf32>
    %cst_20 = arith.constant dense<0xFF800000> : vector<8xf32>
    %58 = vector.multi_reduction <maximumf>, %57, %cst_20 [1] : vector<8x8xf32> to vector<8xf32>
    %59 = vector.shape_cast %58 : vector<8xf32> to vector<8x1xf32>
    %60 = vector.broadcast %59 : vector<8x1xf32> to vector<8x8xf32>
    %61 = arith.subf %57, %60 : vector<8x8xf32>
    %62 = math.exp %61 : vector<8x8xf32>
    %cst_21 = arith.constant dense<0.000000e+00> : vector<8xf32>
    %63 = vector.multi_reduction <add>, %62, %cst_21 [1] : vector<8x8xf32> to vector<8xf32>
    %64 = vector.shape_cast %63 : vector<8xf32> to vector<8x1xf32>
    %65 = tpu.reciprocal %64 {approx = true} : vector<8x1xf32> -> vector<8x1xf32>
    %66 = vector.broadcast %65 : vector<8x1xf32> to vector<8x8xf32>
    %67 = arith.mulf %62, %66 : vector<8x8xf32>
    %68 = arith.truncf %67 : vector<8x8xf32> to vector<8x8xbf16>
    %69 = arith.truncf %52 : vector<8x8xf32> to vector<8x8xbf16>
    %cst_22 = arith.constant dense<0.000000e+00> : vector<8x8xf32>
    %70 = tpu.matmul %68, %69, %cst_22 {dimension_numbers = #tpu.dot_dimension_numbers<[1], [0], [0], [1], [0, 0, 1, 1], [], []>} : vector<8x8xbf16>, vector<8x8xbf16>, vector<8x8xf32> -> vector<8x8xf32>
    %71 = vector.extract_strided_slice %28 {offsets = [0, 16], sizes = [8, 8], strides = [1, 1]} : vector<8x96xf32> to vector<8x8xf32>
    %72 = vector.extract_strided_slice %28 {offsets = [0, 48], sizes = [8, 8], strides = [1, 1]} : vector<8x96xf32> to vector<8x8xf32>
    %73 = vector.extract_strided_slice %28 {offsets = [0, 80], sizes = [8, 8], strides = [1, 1]} : vector<8x96xf32> to vector<8x8xf32>
    %74 = arith.truncf %71 : vector<8x8xf32> to vector<8x8xbf16>
    %75 = arith.truncf %72 : vector<8x8xf32> to vector<8x8xbf16>
    %cst_23 = arith.constant dense<0.000000e+00> : vector<8x8xf32>
    %76 = tpu.matmul %74, %75, %cst_23 {dimension_numbers = #tpu.dot_dimension_numbers<[1], [1], [0], [0], [0, 0, 1, 0], [], []>} : vector<8x8xbf16>, vector<8x8xbf16>, vector<8x8xf32> -> vector<8x8xf32>
    %cst_24 = arith.constant 0.353553385 : f32
    %77 = vector.broadcast %cst_24 : f32 to vector<8x8xf32>
    %78 = arith.mulf %77, %76 : vector<8x8xf32>
    %cst_25 = arith.constant dense<0xFF800000> : vector<8xf32>
    %79 = vector.multi_reduction <maximumf>, %78, %cst_25 [1] : vector<8x8xf32> to vector<8xf32>
    %80 = vector.shape_cast %79 : vector<8xf32> to vector<8x1xf32>
    %81 = vector.broadcast %80 : vector<8x1xf32> to vector<8x8xf32>
    %82 = arith.subf %78, %81 : vector<8x8xf32>
    %83 = math.exp %82 : vector<8x8xf32>
    %cst_26 = arith.constant dense<0.000000e+00> : vector<8xf32>
    %84 = vector.multi_reduction <add>, %83, %cst_26 [1] : vector<8x8xf32> to vector<8xf32>
    %85 = vector.shape_cast %84 : vector<8xf32> to vector<8x1xf32>
    %86 = tpu.reciprocal %85 {approx = true} : vector<8x1xf32> -> vector<8x1xf32>
    %87 = vector.broadcast %86 : vector<8x1xf32> to vector<8x8xf32>
    %88 = arith.mulf %83, %87 : vector<8x8xf32>
    %89 = arith.truncf %88 : vector<8x8xf32> to vector<8x8xbf16>
    %90 = arith.truncf %73 : vector<8x8xf32> to vector<8x8xbf16>
    %cst_27 = arith.constant dense<0.000000e+00> : vector<8x8xf32>
    %91 = tpu.matmul %89, %90, %cst_27 {dimension_numbers = #tpu.dot_dimension_numbers<[1], [0], [0], [1], [0, 0, 1, 1], [], []>} : vector<8x8xbf16>, vector<8x8xbf16>, vector<8x8xf32> -> vector<8x8xf32>
    %92 = vector.extract_strided_slice %28 {offsets = [0, 24], sizes = [8, 8], strides = [1, 1]} : vector<8x96xf32> to vector<8x8xf32>
    %93 = vector.extract_strided_slice %28 {offsets = [0, 56], sizes = [8, 8], strides = [1, 1]} : vector<8x96xf32> to vector<8x8xf32>
    %94 = vector.extract_strided_slice %28 {offsets = [0, 88], sizes = [8, 8], strides = [1, 1]} : vector<8x96xf32> to vector<8x8xf32>
    %95 = arith.truncf %92 : vector<8x8xf32> to vector<8x8xbf16>
    %96 = arith.truncf %93 : vector<8x8xf32> to vector<8x8xbf16>
    %cst_28 = arith.constant dense<0.000000e+00> : vector<8x8xf32>
    %97 = tpu.matmul %95, %96, %cst_28 {dimension_numbers = #tpu.dot_dimension_numbers<[1], [1], [0], [0], [0, 0, 1, 0], [], []>} : vector<8x8xbf16>, vector<8x8xbf16>, vector<8x8xf32> -> vector<8x8xf32>
    %cst_29 = arith.constant 0.353553385 : f32
    %98 = vector.broadcast %cst_29 : f32 to vector<8x8xf32>
    %99 = arith.mulf %98, %97 : vector<8x8xf32>
    %cst_30 = arith.constant dense<0xFF800000> : vector<8xf32>
    %100 = vector.multi_reduction <maximumf>, %99, %cst_30 [1] : vector<8x8xf32> to vector<8xf32>
    %101 = vector.shape_cast %100 : vector<8xf32> to vector<8x1xf32>
    %102 = vector.broadcast %101 : vector<8x1xf32> to vector<8x8xf32>
    %103 = arith.subf %99, %102 : vector<8x8xf32>
    %104 = math.exp %103 : vector<8x8xf32>
    %cst_31 = arith.constant dense<0.000000e+00> : vector<8xf32>
    %105 = vector.multi_reduction <add>, %104, %cst_31 [1] : vector<8x8xf32> to vector<8xf32>
    %106 = vector.shape_cast %105 : vector<8xf32> to vector<8x1xf32>
    %107 = tpu.reciprocal %106 {approx = true} : vector<8x1xf32> -> vector<8x1xf32>
    %108 = vector.broadcast %107 : vector<8x1xf32> to vector<8x8xf32>
    %109 = arith.mulf %104, %108 : vector<8x8xf32>
    %110 = arith.truncf %109 : vector<8x8xf32> to vector<8x8xbf16>
    %111 = arith.truncf %94 : vector<8x8xf32> to vector<8x8xbf16>
    %cst_32 = arith.constant dense<0.000000e+00> : vector<8x8xf32>
    %112 = tpu.matmul %110, %111, %cst_32 {dimension_numbers = #tpu.dot_dimension_numbers<[1], [0], [0], [1], [0, 0, 1, 1], [], []>} : vector<8x8xbf16>, vector<8x8xbf16>, vector<8x8xf32> -> vector<8x8xf32>
    %113 = tpu.concatenate %49, %70, %91, %112 in 1 : vector<8x8xf32>, vector<8x8xf32>, vector<8x8xf32>, vector<8x8xf32> -> vector<8x32xf32>
    %114 = arith.truncf %113 : vector<8x32xf32> to vector<8x32xbf16>
    %c0_33 = arith.constant 0 : index
    %c0_34 = arith.constant 0 : index
    %115 = vector.load %arg5[%c0_33, %c0_34] : memref<32x32xbf16, #tpu.memory_space<vmem>>, vector<32x32xbf16>
    %cst_35 = arith.constant dense<0.000000e+00> : vector<8x32xf32>
    %116 = tpu.matmul %114, %115, %cst_35 {dimension_numbers = #tpu.dot_dimension_numbers<[1], [0], [0], [1], [0, 0, 1, 1], [], []>} : vector<8x32xbf16>, vector<32x32xbf16>, vector<8x32xf32> -> vector<8x32xf32>
    %117 = arith.addf %116, %1 : vector<8x32xf32>
    %c0_36 = arith.constant 0 : index
    %c0_37 = arith.constant 0 : index
    %118 = vector.load %arg6[%c0_36, %c0_37] : memref<1x32xf32, #tpu.memory_space<vmem>>, vector<1x32xf32>
    %c0_38 = arith.constant 0 : index
    %c0_39 = arith.constant 0 : index
    %119 = vector.load %arg7[%c0_38, %c0_39] : memref<1x32xf32, #tpu.memory_space<vmem>>, vector<1x32xf32>
    %cst_40 = arith.constant dense<0.000000e+00> : vector<8xf32>
    %120 = vector.multi_reduction <add>, %117, %cst_40 [1] : vector<8x32xf32> to vector<8xf32>
    %121 = vector.shape_cast %120 : vector<8xf32> to vector<8x1xf32>
    %cst_41 = arith.constant 3.200000e+01 : f32
    %122 = vector.broadcast %cst_41 : f32 to vector<8x1xf32>
    %123 = arith.divf %121, %122 : vector<8x1xf32>
    %124 = vector.broadcast %123 : vector<8x1xf32> to vector<8x32xf32>
    %125 = arith.subf %117, %124 : vector<8x32xf32>
    %126 = arith.mulf %125, %125 : vector<8x32xf32>
    %cst_42 = arith.constant dense<0.000000e+00> : vector<8xf32>
    %127 = vector.multi_reduction <add>, %126, %cst_42 [1] : vector<8x32xf32> to vector<8xf32>
    %128 = vector.shape_cast %127 : vector<8xf32> to vector<8x1xf32>
    %cst_43 = arith.constant 3.200000e+01 : f32
    %129 = vector.broadcast %cst_43 : f32 to vector<8x1xf32>
    %130 = arith.divf %128, %129 : vector<8x1xf32>
    %131 = vector.broadcast %123 : vector<8x1xf32> to vector<8x32xf32>
    %132 = arith.subf %117, %131 : vector<8x32xf32>
    %cst_44 = arith.constant 9.99999974E-6 : f32
    %133 = vector.broadcast %cst_44 : f32 to vector<8x1xf32>
    %134 = arith.addf %130, %133 : vector<8x1xf32>
    %135 = math.rsqrt %134 : vector<8x1xf32>
    %136 = vector.broadcast %135 : vector<8x1xf32> to vector<8x32xf32>
    %137 = arith.mulf %132, %136 : vector<8x32xf32>
    %138 = vector.broadcast %118 : vector<1x32xf32> to vector<8x32xf32>
    %139 = arith.mulf %137, %138 : vector<8x32xf32>
    %140 = vector.broadcast %119 : vector<1x32xf32> to vector<8x32xf32>
    %141 = arith.addf %139, %140 : vector<8x32xf32>
    %142 = arith.truncf %141 : vector<8x32xf32> to vector<8x32xbf16>
    %c0_45 = arith.constant 0 : index
    %c0_46 = arith.constant 0 : index
    %143 = vector.load %arg8[%c0_45, %c0_46] : memref<32x512xbf16, #tpu.memory_space<vmem>>, vector<32x512xbf16>
    %cst_47 = arith.constant dense<0.000000e+00> : vector<8x512xf32>
    %144 = tpu.matmul %142, %143, %cst_47 {dimension_numbers = #tpu.dot_dimension_numbers<[1], [0], [0], [1], [0, 0, 1, 1], [], []>} : vector<8x32xbf16>, vector<32x512xbf16>, vector<8x512xf32> -> vector<8x512xf32>
    %c0_48 = arith.constant 0 : index
    %c0_49 = arith.constant 0 : index
    %145 = vector.load %arg9[%c0_48, %c0_49] : memref<1x512xf32, #tpu.memory_space<vmem>>, vector<1x512xf32>
    %146 = vector.broadcast %145 : vector<1x512xf32> to vector<8x512xf32>
    %147 = arith.addf %144, %146 : vector<8x512xf32>
    %cst_50 = arith.constant 0.000000e+00 : f32
    %148 = vector.broadcast %cst_50 : f32 to vector<8x512xf32>
    %149 = arith.maximumf %147, %148 : vector<8x512xf32>
    %150 = arith.truncf %149 : vector<8x512xf32> to vector<8x512xbf16>
    %c0_51 = arith.constant 0 : index
    %c0_52 = arith.constant 0 : index
    %151 = vector.load %arg10[%c0_51, %c0_52] : memref<512x32xbf16, #tpu.memory_space<vmem>>, vector<512x32xbf16>
    %cst_53 = arith.constant dense<0.000000e+00> : vector<8x32xf32>
    %152 = tpu.matmul %150, %151, %cst_53 {dimension_numbers = #tpu.dot_dimension_numbers<[1], [0], [0], [1], [0, 0, 1, 1], [], []>} : vector<8x512xbf16>, vector<512x32xbf16>, vector<8x32xf32> -> vector<8x32xf32>
    %c0_54 = arith.constant 0 : index
    %c0_55 = arith.constant 0 : index
    %153 = vector.load %arg11[%c0_54, %c0_55] : memref<1x32xf32, #tpu.memory_space<vmem>>, vector<1x32xf32>
    %154 = vector.broadcast %153 : vector<1x32xf32> to vector<8x32xf32>
    %155 = arith.addf %152, %154 : vector<8x32xf32>
    %156 = arith.addf %155, %117 : vector<8x32xf32>
    %c0_56 = arith.constant 0 : index
    %c0_57 = arith.constant 0 : index
    %c0_58 = arith.constant 0 : index
    %157 = vector.load %arg12[%c0_56, %c0_57, %c0_58] : memref<1x8x32xf32, #tpu.memory_space<vmem>>, vector<1x8x32xf32>
    %158 = vector.shape_cast %157 : vector<1x8x32xf32> to vector<8x32xf32>
    %159 = vector.shape_cast %156 : vector<8x32xf32> to vector<1x8x32xf32>
    tpu.vector_store %arg12[%c0_56, %c0_57, %c0_58], %159 {strides = array<i32>} : memref<1x8x32xf32, #tpu.memory_space<vmem>>, vector<1x8x32xf32>,
    return
  }
  func.func @transform_0(%arg0: i32) -> (i32, i32, i32) {
    %c0_i32 = arith.constant 0 : i32
    %c0_i32_0 = arith.constant 0 : i32
    %c0_i32_1 = arith.constant 0 : i32
    return %arg0, %c0_i32, %c0_i32_0 : i32, i32, i32
  }
  func.func @transform_1(%arg0: i32) -> (i32, i32) {
    %c0_i32 = arith.constant 0 : i32
    %c0_i32_0 = arith.constant 0 : i32
    %c0_i32_1 = arith.constant 0 : i32
    return %c0_i32, %c0_i32_0 : i32, i32
  }
  func.func @transform_2(%arg0: i32) -> (i32, i32) {
    %c0_i32 = arith.constant 0 : i32
    %c0_i32_0 = arith.constant 0 : i32
    %c0_i32_1 = arith.constant 0 : i32
    return %c0_i32, %c0_i32_0 : i32, i32
  }
  func.func @transform_3(%arg0: i32) -> (i32, i32) {
    %c0_i32 = arith.constant 0 : i32
    %c0_i32_0 = arith.constant 0 : i32
    %c0_i32_1 = arith.constant 0 : i32
    return %c0_i32, %c0_i32_0 : i32, i32
  }
  func.func @transform_4(%arg0: i32) -> (i32, i32) {
    %c0_i32 = arith.constant 0 : i32
    %c0_i32_0 = arith.constant 0 : i32
    %c0_i32_1 = arith.constant 0 : i32
    return %c0_i32, %c0_i32_0 : i32, i32
  }
  func.func @transform_5(%arg0: i32) -> (i32, i32) {
    %c0_i32 = arith.constant 0 : i32
    %c0_i32_0 = arith.constant 0 : i32
    %c0_i32_1 = arith.constant 0 : i32
    return %c0_i32, %c0_i32_0 : i32, i32
  }
  func.func @transform_6(%arg0: i32) -> (i32, i32) {
    %c0_i32 = arith.constant 0 : i32
    %c0_i32_0 = arith.constant 0 : i32
    %c0_i32_1 = arith.constant 0 : i32
    return %c0_i32, %c0_i32_0 : i32, i32
  }
  func.func @transform_7(%arg0: i32) -> (i32, i32) {
    %c0_i32 = arith.constant 0 : i32
    %c0_i32_0 = arith.constant 0 : i32
    %c0_i32_1 = arith.constant 0 : i32
    return %c0_i32, %c0_i32_0 : i32, i32
  }
  func.func @transform_8(%arg0: i32) -> (i32, i32) {
    %c0_i32 = arith.constant 0 : i32
    %c0_i32_0 = arith.constant 0 : i32
    %c0_i32_1 = arith.constant 0 : i32
    return %c0_i32, %c0_i32_0 : i32, i32
  }
  func.func @transform_9(%arg0: i32) -> (i32, i32) {
    %c0_i32 = arith.constant 0 : i32
    %c0_i32_0 = arith.constant 0 : i32
    %c0_i32_1 = arith.constant 0 : i32
    return %c0_i32, %c0_i32_0 : i32, i32
  }
  func.func @transform_10(%arg0: i32) -> (i32, i32) {
    %c0_i32 = arith.constant 0 : i32
    %c0_i32_0 = arith.constant 0 : i32
    %c0_i32_1 = arith.constant 0 : i32
    return %c0_i32, %c0_i32_0 : i32, i32
  }
  func.func @transform_11(%arg0: i32) -> (i32, i32, i32) {
    %c0_i32 = arith.constant 0 : i32
    %c0_i32_0 = arith.constant 0 : i32
    %c0_i32_1 = arith.constant 0 : i32
    return %arg0, %c0_i32, %c0_i32_0 : i32, i32, i32
  }
}

</mosaic_0001>

<bundles_post_ra>
// kernel: tpu_custom_call.1
= control target key start
LH: loop header
LB: loop body
LE: loop exit
PB: predicated region body
PF: predicated region fallthrough
CT: control target
= control target key end

     0   :  { %s2060_s0 = inlined_call_operand.vmem [shape: f32[2,8,32], index: 0, kind: input, shape index: {}]   ;;  %s2061_s1 = inlined_call_operand.vmem [shape: f32[1,32], index: 1, kind: input, shape index: {}]   ;;  %s2062_s2 = inlined_call_operand.vmem [shape: f32[1,32], index: 2, kind: input, shape index: {}]   ;;  %s2063_s3 = inlined_call_operand.vmem [shape: bf16[32,96], index: 3, kind: input, shape index: {}]   ;;  %s2064_s4 = inlined_call_operand.vmem [shape: bf16[32,32], index: 4, kind: input, shape index: {}]   ;;  %s2065_s5 = inlined_call_operand.vmem [shape: f32[1,32], index: 5, kind: input, shape index: {}]   ;;  %s2066_s6 = inlined_call_operand.vmem [shape: f32[1,32], index: 6, kind: input, shape index: {}]   ;;  %s2067_s7 = inlined_call_operand.vmem [shape: bf16[32,512], index: 7, kind: input, shape index: {}]   ;;  %s2068_s8 = inlined_call_operand.vmem [shape: f32[1,512], index: 8, kind: input, shape index: {}]   ;;  %s2069_s9 = inlined_call_operand.vmem [shape: bf16[512,32], index: 9, kind: input, shape index: {}]   ;;  %s2070_s10 = inlined_call_operand.vmem [shape: f32[1,32], index: 10, kind: input, shape index: {}]   ;;  %s2071_s11 = inlined_call_operand.hbm [shape: f32[2,8,32], index: 11, kind: output, shape index: {}]  }
   0x1   :  { %2072 = sst [smem:[#allocation5_spill]] %s2060_s0 }
   0x2   :  { %16 = vsyncpa [#allocation3], 0 }
   0x3   :  { %18 = vsyncpa [#allocation3 + $0x1], 0  ;;  %s1744_s17 = smov 0   ;;  %s1746_s18 = smov 0  }
   0x4   :  { %s1748_s19 = smov 0   ;;  %s1750_s20 = smov 0  }
   0x5 LB: > { %s1765_s21 = sadd.s32 4294967295, %s1667_s20   ;;  %s1280_s22 = sadd.s32 4294967294, %s1667_s20   ;;  %s1667_s20 = sphi %s1750_s20, %s2079_s20   ;;  %s1663_s19 = sphi %s1748_s19, %s2078_s19   ;;  %s1659_s18 = sphi %s1746_s18, %s2077_s18   ;;  %s1655_s17 = sphi %s1744_s17, %s2076_s17  }
   0x6   : > { %s1769_s23 = sadd.s32 1, %s1667_s20   ;;  %s267_s24 = sadd.s32 1, %s1663_s19 }
   0x7   : > { %s264_s25 = ssub.s32 %s1667_s20, %s1769_s23  ;;  %p277_p0 = scmp.ne.s32.totalorder %s1663_s19, %s1659_s18 }
   0x8   : > { %p265_p1 = scmp.eq.s32.totalorder %s264_s25, 0  ;;  %p278_p2 = scmp.eq.s32.totalorder %s1765_s21, 1 }
   0x9   : > { %p283_p3 = scmp.ne.s32.totalorder %s1659_s18, %s1655_s17  ;;  %p284_p4 = scmp.eq.s32.totalorder %s1280_s22, 1 }
   0xa   : > { %s1780_s26 = scalar_select %p265_p1, %s1663_s19, %s267_s24  }
   0xb   : > { %p1782_p5 = por %p278_p2, %p277_p0  ;;  %p1786_p6 = por %p284_p4, %p283_p3 }
   0xc   : > { %p1283_p7 = scmp.ge.s32.totalorder %s1667_s20, 1  ;;  %p339_p8 = scmp.lt.s32.totalorder %s1667_s20, 3 }
   0xe   : > { %p340_p9 = pnand %p1283_p7, %p339_p8 }
   0xf   : > { %p378_p10 = scmp.lt.s32.totalorder (!%p340_p9), %s1765_s21, 1  ;;  %s2075_s0 = sld [smem:[#allocation5_spill]] (!%p340_p9) }
  0x10   : > { %343 = sbr.rel (%p340_p9) target bundleno = 1893 (0x765), region = 64  ;;  %s1670_s13 = smov (!%p340_p9), 104  }
  0x11   : > { %s1672_s15 = smov (!%p340_p9), 96   ;;  %s1673_s16 = smov (!%p340_p9), 72  }
  0x12   : > { %s1674_s22 = smov (!%p340_p9), 88   ;;  %s1675_s24 = smov (!%p340_p9), 112  }
  0x13   : > { %s1676_s25 = smov (!%p340_p9), 80   ;;  %s1679_s12 = smov (!%p340_p9), 40  }
  0x15   : > { %s379_s29 = scalar_select %p378_p10, %s1765_s21, 1  ;;  %vm386_vm0 = vcmask 261120   ;;  %v1669_v2 = vmov 32.0   ;;  %v1481_v14 = vld [vmem:[%s2063_s3 + $0x8] sm:$0xff]  ;;  %v1480_v15 = vld [vmem:[%s2063_s3] sm:$0xff]  ;;  %vm461_vm5 = vcmask 64512  }
  0x16   : > { %1583 = vrcp.f32 %v1669_v2  ;;  %450 = vmatpush.bf16.msra.mxu0 %v1481_v14  ;;  %v1578_v25 = vld [vmem:[%s2061_s1] ss:$0 sm:$0xff]  ;;  %vm499_vm6 = vcmask 1043456   ;;  %vm700_vm7 = vcmask 130048   ;;  %vm702_vm8 = vcmask 195584  }
  0x17   : > { %s1285_s30 = sshll.u32 %s379_s29, 3  ;;  %v1579_v28 = vld [vmem:[%s2062_s2] ss:$0 sm:$0xff]  ;;  %s1677_s29 = smov 64  }
  0x18   : > { %s381_s14 = scalar_lea.vmem %s2075_s0, %s1285_s30  ;;  %s1678_s30 = smov 56  }
  0x19   : > { %v1797_v0 = vld [vmem:[%s381_s14] sm:$0xff]  ;;  %s1671_s14 = smov 120  }
  0x1a   : > { %v387_v1 = vsel %vm386_vm0, %v1797_v0, 0.0  ;;  %451 = vmatpush.bf16.msra.mxu0 %v1480_v15 }
  0x1b   : > { %388 = vadd.xlane.f32.xlu0 %v387_v1 }
  0x1c   : > { %v1584_v3 = vpop.eup %1583 }
  0x1d   : > { %v391_v4 = vmul.f32 32.0, %v1584_v3  ;;  %vm395_vm1 = vweird.f32 %v1584_v3 }
  0x1f   : > { %v392_v5 = vsub.f32 1.0, %v391_v4 }
  0x21   : > { %v393_v6 = vmul.f32 %v1584_v3, %v392_v5 }
  0x23   : > { %v394_v7 = vadd.f32 %v1584_v3, %v393_v6 }
  0x25   : > { %v1801_v8 = vsel %vm395_vm1, %v1584_v3, %v394_v7 }
  0x8e   : > { %v389_v9 = vpop.xlane.xlu0 %388 }
  0x8f   : > { %v397_v10 = vmul.f32 %v1801_v8, %v389_v9 }
  0x91   : > { %v398_v11 = vsub.f32 %v1797_v0, %v397_v10 }
  0x93   : > { %v399_v12 = vmul.f32 %v398_v11, %v398_v11 }
  0x95   : > { %v400_v13 = vsel %vm386_vm0, %v399_v12, 0.0 }
  0x96   : > { %401 = vadd.xlane.f32.xlu0 %v400_v13 }
 0x109   : > { %v402_v16 = vpop.xlane.xlu0 %401 }
 0x10a   : > { %v403_v17 = vmul.f32 %v402_v16, %v1801_v8 }
 0x10c   : > { %v404_v18 = vadd.f32 1e-05, %v403_v17 }
 0x10e   : > { %1585 = vrsqrt.f32 %v404_v18  ;;  %vm411_vm3 = vweird.f32 %v404_v18 }
 0x114   : > { %v1586_v19 = vpop.eup %1585 }
 0x115   : > { %v406_v20 = vmul.f32 %v1586_v19, %v404_v18  ;;  %vm412_vm2 = vweird.f32 %v1586_v19 }
 0x116   : > { %vm413_vm4 = vmor %vm411_vm3, %vm412_vm2 }
 0x117   : > { %v407_v21 = vmul.f32 %v1586_v19, %v406_v20 }
 0x119   : > { %v408_v22 = vmul.f32 0.5, %v407_v21 }
 0x11b   : > { %v409_v23 = vsub.f32 1.5, %v408_v22 }
 0x11d   : > { %v410_v24 = vmul.f32 %v1586_v19, %v409_v23 }
 0x11f   : > { %v414_v26 = vsel %vm413_vm4, %v1586_v19, %v410_v24 }
 0x120   : > { %v415_v27 = vmul.f32 %v414_v26, %v398_v11 }
 0x122   : > { %v419_v29 = vmul.f32 %v1578_v25, %v415_v27 }
 0x124   : > { %v423_v30 = vadd.f32 %v1579_v28, %v419_v29 }
 0x126   : > { %v424_v31 = vpack.c.bf16 %v423_v30, %v423_v30 }
 0x128   : > { %1294 = vmatmul.msk.bf16.vlgmr.msra.gmra.mxu0 %vm386_vm0, %v424_v31 }
 0x1a5   : > { %v453_v32 = vpop.f32.mrf.mxu0 }
 0x1a6   : > { %v457_v33 = vpack.c.bf16 %v453_v32, %v453_v32 }
 0x1a8   : > { %630 = vrot.lane.b32.xlu0 %v457_v33, %s1670_s13  ;;  %516 = vrot.lane.b32.xlu2 %v457_v33, %s1671_s14  ;;  %s1680_s13 = smov 48   ;;  %s1681_s14 = smov 8  }
 0x1a9   : > { %459 = vrot.lane.b32.xlu1 %v457_v33, %s1672_s15  ;;  %s1682_s15 = smov 16  }
 0x1ad   : > { %v455_v34 = vpop.f32.mrf.mxu0 }
 0x1b0   : > { %632 = vrot.lane.b32.xlu2 %v457_v33, %s1673_s16  ;;  %s1683_s16 = smov 24  }
 0x1b1   : > { %518 = vrot.lane.b32.xlu1 %v457_v33, %s1674_s22 }
 0x1b8   : > { %573 = vrot.lane.b32.xlu2 %v457_v33, %s1675_s24  ;;  %s1477_s24 = sshll.u32 %s1765_s21, 3 }
 0x1b9   : > { %575 = vrot.lane.b32.xlu1 %v457_v33, %s1676_s25  ;;  %s1625_s25 = scalar_lea.hbm %s2071_s11, 16 }
 0x202   : > { %v517_v35 = vpop.permute.xlu2 %516 }
 0x20a   : > { %v633_v38 = vpop.permute.xlu2 %632 }
 0x20b   : > { %v638_v41 = vsel %vm461_vm5, %v633_v38, 0 }
 0x212   : > { %v574_v44 = vpop.permute.xlu2 %573 }
 0x21a   : > { %v631_v45 = vpop.permute.xlu0 %630 }
 0x21b   : > { %v460_v36 = vpop.permute.xlu1 %459 }
 0x21c   : > { %v466_v37 = vsel %vm461_vm5, %v460_v36, 0 }
 0x21d   : > { %475 = vmatpush.bf16.xpose.msra.mxu1 %v466_v37 }
 0x223   : > { %v519_v39 = vpop.permute.xlu1 %518 }
 0x224   : > { %1295 = vmatmul.msk.bf16.vlgmr.msra.gmra.mxu1 %vm461_vm5, %v457_v33  ;;  %v524_v40 = vsel %vm461_vm5, %v519_v39, 0 }
 0x225   : > { %533 = vmatpush.bf16.xpose.msra.mxu3 %v524_v40 }
 0x22b   : > { %v576_v42 = vpop.permute.xlu1 %575 }
 0x22c   : > { %1297 = vmatmul.msk.bf16.vlgmr.msra.gmra.mxu3 %vm461_vm5, %v517_v35  ;;  %v581_v43 = vsel %vm461_vm5, %v576_v42, 0 }
 0x22d   : > { %647 = vmatpush.bf16.xpose.msrb.mxu3 %v638_v41  ;;  %590 = vmatpush.bf16.xpose.msrb.mxu0 %v581_v43 }
 0x234   : > { %1299 = vmatmul.msk.bf16.vlgmr.msrb.gmra.mxu0 %vm461_vm5, %v574_v44 }
 0x23c   : > { %1301 = vmatmul.msk.bf16.vlgmr.msrb.gmra.mxu3 %vm461_vm5, %v631_v45 }
 0x2a1   : > { %v477_v46 = vpop.f32.mrf.mxu1 }
 0x2a2   : > { %v481_v47 = vmul.f32 0.35355338, %v477_v46 }
 0x2a4   : > { %v482_v48 = vsel %vm461_vm5, %v481_v47, -inf }
 0x2a5   : > { %483 = vmax.xlane.f32.xlu1 %v482_v48 }
 0x2a9   : > { %v479_v49 = vpop.f32.mrf.mxu1 }
 0x2af   : > { %v535_v50 = vpop.f32.mrf.mxu3 }
 0x2b0   : > { %v539_v51 = vmul.f32 0.35355338, %v535_v50 }
 0x2b1   : > { %v592_v52 = vpop.f32.mrf.mxu0 }
 0x2b2   : > { %v540_v53 = vsel %vm461_vm5, %v539_v51, -inf  ;;  %v596_v54 = vmul.f32 0.35355338, %v592_v52  ;;  %v1483_v52 = vld [vmem:[%s2064_s4 + $0x8] sm:$0xff] }
 0x2b3   : > { %541 = vmax.xlane.f32.xlu2 %v540_v53  ;;  %730 = vmatpush.bf16.msra.mxu0 %v1483_v52  ;;  %v1482_v53 = vld [vmem:[%s2064_s4] sm:$0xff]  ;;  %v1495_v52 = vld [vmem:[%s2069_s9 + $0x18] sm:$0xff] }
 0x2b4   : > { %v597_v57 = vsel %vm461_vm5, %v596_v54, -inf }
 0x2b7   : > { %v537_v55 = vpop.f32.mrf.mxu3  ;;  %731 = vmatpush.bf16.msra.mxu0 %v1482_v53  ;;  %v1519_v53 = vld [vmem:[%s2069_s9 + $0xd8] sm:$0xff] }
 0x2b9   : > { %v594_v56 = vpop.f32.mrf.mxu0 }
 0x2bb   : > { %598 = vmax.xlane.f32.xlu2 %v597_v57 }
 0x2bf   : > { %v649_v58 = vpop.f32.mrf.mxu3 }
 0x2c0   : > { %v653_v59 = vmul.f32 0.35355338, %v649_v58 }
 0x2c2   : > { %v654_v60 = vsel %vm461_vm5, %v653_v59, -inf }
 0x2c3   : > { %655 = vmax.xlane.f32.xlu0 %v654_v60 }
 0x2c7   : > { %v651_v61 = vpop.f32.mrf.mxu3 }
 0x2d3   : > { %494 = vrot.lane.b32.xlu2 %v457_v33, %s1677_s29  ;;  %s1216_s29 = scalar_lea.hbm %s2071_s11, %s1477_s24 }
 0x2d7   : > { %552 = vrot.lane.b32.xlu0 %v457_v33, %s1678_s30 }
 0x2db   : > { %666 = vrot.lane.b32.xlu2 %v457_v33, %s1679_s12 }
 0x2df   : > { %609 = vrot.lane.b32.xlu0 %v457_v33, %s1680_s13  ;;  %s1220_s13 = sshll.u32 %s1216_s29, 4  ;;  %s1221_s13 = int_to_ptr.hbm [resolvable:$true] %s1220_s13 }
 0x318   : > { %v484_v62 = vpop.xlane.xlu1 %483 }
 0x319   : > { %v485_v63 = vsub.f32 %v481_v47, %v484_v62 }
 0x31b   : > { %v486_v1 = vmul.f32 1.442695, %v485_v63 }
 0x31d   : > { %1587 = vpow2.f32 %v486_v1 }
 0x323   : > { %v1588_v2 = vpop.eup %1587 }
 0x324   : > { %v488_v3 = vsel %vm461_vm5, %v1588_v2, 0.0 }
 0x325   : > { %489 = vadd.xlane.f32.xlu1 %v488_v3 }
 0x326   : > { %v542_v4 = vpop.xlane.xlu2 %541 }
 0x327   : > { %v543_v5 = vsub.f32 %v539_v51, %v542_v4 }
 0x329   : > { %v544_v6 = vmul.f32 1.442695, %v543_v5 }
 0x32b   : > { %1589 = vpow2.f32 %v544_v6 }
 0x32e   : > { %v599_v7 = vpop.xlane.xlu2 %598 }
 0x32f   : > { %v600_v15 = vsub.f32 %v596_v54, %v599_v7  ;;  %v1332_v7 = vld [vmem:[%s2067_s7 + $0x30] sm:$0xf0] }
 0x331   : > { %v1590_v9 = vpop.eup %1589  ;;  %v601_v17 = vmul.f32 1.442695, %v600_v15 }
 0x332   : > { %v546_v10 = vsel %vm461_vm5, %v1590_v9, 0.0 }
 0x333   : > { %547 = vadd.xlane.f32.xlu1 %v546_v10 }
 0x336   : > { %v656_v11 = vpop.xlane.xlu0 %655  ;;  %v495_v12 = vpop.permute.xlu2 %494 }
 0x337   : > { %v657_v13 = vsub.f32 %v653_v59, %v656_v11  ;;  %v501_v14 = vsel %vm499_vm6, %v495_v12, 0  ;;  %v1491_v11 = vld [vmem:[%s2067_s7 + $0x34] sm:$0xf0]  ;;  %v1330_v12 = vld [vmem:[%s2067_s7 + $0x20] sm:$0xf] }
 0x338   : > { %510 = vmatpush.bf16.msra.mxu2 %v501_v14 }
 0x339   : > { %v658_v16 = vmul.f32 1.442695, %v657_v13  ;;  %v1490_v13 = vld [vmem:[%s2067_s7 + $0x2c] sm:$0xf0] }
 0x33a   : > { %v1331_v15 = vor.u32 %v1490_v13, %v1330_v12  ;;  %v1501_v12 = vld [vmem:[%s2069_s9 + $0x48] sm:$0xff] }
 0x33b   : > { %1591 = vpow2.f32 %v658_v16  ;;  %v1489_v16 = vld [vmem:[%s2067_s7 + $0x2c] sm:$0xf] }
 0x33c   : > { %1593 = vpow2.f32 %v601_v17  ;;  %v1340_v17 = vld [vmem:[%s2067_s7 + $0x38] sm:$0xf0]  ;;  %v1509_v13 = vld [vmem:[%s2069_s9 + $0x88] sm:$0xff] }
 0x33e   : > { %v667_v29 = vpop.permute.xlu2 %666 }
 0x33f   : > { %v672_v31 = vsel %vm499_vm6, %v667_v29, 0  ;;  %v1324_v29 = vld [vmem:[%s2067_s7 + $0x18] sm:$0xf0] }
 0x341   : > { %v1592_v18 = vpop.eup %1591 }
 0x342   : > { %v660_v19 = vsel %vm461_vm5, %v1592_v18, 0.0  ;;  %v1594_v20 = vpop.eup %1593 }
 0x343   : > { %661 = vadd.xlane.f32.xlu1 %v660_v19  ;;  %v603_v22 = vsel %vm461_vm5, %v1594_v20, 0.0  ;;  %v1316_v19 = vld [vmem:[%s2067_s7 + $0x10] sm:$0xf0] }
 0x349   : > { %v553_v21 = vpop.permute.xlu0 %552 }
 0x34a   : > { %v558_v23 = vsel %vm499_vm6, %v553_v21, 0  ;;  %v1322_v21 = vld [vmem:[%s2067_s7 + $0x8] sm:$0xf] }
 0x34b   : > { %604 = vadd.xlane.f32.xlu1 %v603_v22  ;;  %567 = vmatpush.bf16.msrb.mxu2 %v558_v23  ;;  %v1487_v23 = vld [vmem:[%s2067_s7 + $0x14] sm:$0xf0] }
 0x351   : > { %v610_v24 = vpop.permute.xlu0 %609 }
 0x352   : > { %v615_v25 = vsel %vm499_vm6, %v610_v24, 0  ;;  %v1314_v24 = vld [vmem:[%s2067_s7] sm:$0xf] }
 0x353   : > { %624 = vmatpush.bf16.msrb.mxu1 %v615_v25  ;;  %v1486_v25 = vld [vmem:[%s2067_s7 + $0xc] sm:$0xf0] }
 0x357   : > { %837 = vmatpush.bf16.msra.mxu1 %v1331_v15  ;;  %v1508_v15 = vld [vmem:[%s2069_s9 + $0x80] sm:$0xff] }
 0x398   : > { %v490_v26 = vpop.xlane.xlu1 %489 }
 0x399   : > { %1595 = vrcp.f32 %v490_v26  ;;  %v1323_v26 = vor.u32 %v1487_v23, %v1322_v21 }
 0x39f   : > { %v1596_v27 = vpop.eup %1595 }
 0x3a0   : > { %v492_v28 = vmul.f32 %v1596_v27, %v1588_v2  ;;  %v1315_v27 = vor.u32 %v1486_v25, %v1314_v24 }
 0x3a2   : > { %v493_v30 = vpack.c.bf16 %v492_v28, %v492_v28  ;;  %v1485_v28 = vld [vmem:[%s2067_s7 + $0xc] sm:$0xf]  ;;  %838 = vmatpush.bf16.msra.mxu1 %v1315_v27 }
 0x3a4   : > { %1296 = vmatmul.msk.bf16.vlgmr.msra.gmra.mxu2 %vm461_vm5, %v493_v30  ;;  %v1327_v30 = vor.u32 %v1485_v28, %v1324_v29 }
 0x3a5   : > { %681 = vmatpush.bf16.msra.mxu2 %v672_v31 }
 0x3a6   : > { %v548_v32 = vpop.xlane.xlu1 %547 }
 0x3a7   : > { %1597 = vrcp.f32 %v548_v32  ;;  %v1499_v32 = vld [vmem:[%s2069_s9 + $0x38] sm:$0xff] }
 0x3ad   : > { %v1598_v33 = vpop.eup %1597 }
 0x3ae   : > { %v550_v34 = vmul.f32 %v1598_v33, %v1590_v9  ;;  %v1338_v9 = vld [vmem:[%s2067_s7 + $0x28] sm:$0xf]  ;;  %v1523_v33 = vld [vmem:[%s2069_s9 + $0xf8] sm:$0xff] }
 0x3af   : > { %v1339_v14 = vor.u32 %v1491_v11, %v1338_v9  ;;  %v1510_v9 = vld [vmem:[%s2069_s9 + $0x90] sm:$0xff]  ;;  %v1516_v11 = vld [vmem:[%s2069_s9 + $0xc0] sm:$0xff] }
 0x3b0   : > { %v551_v35 = vpack.c.bf16 %v550_v34, %v550_v34 }
 0x3b4   : > { %1298 = vmatmul.msk.bf16.vlgmr.msrb.gmra.mxu2 %vm461_vm5, %v551_v35  ;;  %v1507_v35 = vld [vmem:[%s2069_s9 + $0x78] sm:$0xff] }
 0x3b5   : > { %863 = vmatpush.bf16.msrb.mxu2 %v1339_v14  ;;  %v1500_v14 = vld [vmem:[%s2069_s9 + $0x40] sm:$0xff] }
 0x3b6   : > { %v662_v36 = vpop.xlane.xlu1 %661 }
 0x3b7   : > { %1599 = vrcp.f32 %v662_v36  ;;  %v1515_v36 = vld [vmem:[%s2069_s9 + $0xb8] sm:$0xff] }
 0x3b9   : > { %864 = vmatpush.bf16.msrb.mxu2 %v1323_v26 }
 0x3bd   : > { %v1600_v37 = vpop.eup %1599 }
 0x3be   : > { %v664_v38 = vmul.f32 %v1600_v37, %v1592_v18  ;;  %v605_v39 = vpop.xlane.xlu1 %604  ;;  %v1484_v18 = vld [vmem:[%s2067_s7 + $0x4] sm:$0xf]  ;;  %v1498_v37 = vld [vmem:[%s2069_s9 + $0x30] sm:$0xff] }
 0x3bf   : > { %1601 = vrcp.f32 %v605_v39  ;;  %v1319_v22 = vor.u32 %v1484_v18, %v1316_v19 }
 0x3c0   : > { %v665_v40 = vpack.c.bf16 %v664_v38, %v664_v38  ;;  %v1522_v38 = vld [vmem:[%s2069_s9 + $0xf0] sm:$0xff] }
 0x3c4   : > { %1302 = vmatmul.msk.bf16.vlgmr.msra.gmra.mxu2 %vm461_vm5, %v665_v40  ;;  %v1514_v40 = vld [vmem:[%s2069_s9 + $0xb0] sm:$0xff] }
 0x3c5   : > { %v1602_v41 = vpop.eup %1601  ;;  %1177 = vmatpush.bf16.msra.mxu2 %v1515_v36 }
 0x3c6   : > { %v607_v42 = vmul.f32 %v1602_v41, %v1594_v20  ;;  %v1343_v20 = vor.u32 %v1489_v16, %v1340_v17  ;;  %v1497_v41 = vld [vmem:[%s2069_s9 + $0x28] sm:$0xff]  ;;  %v778_v16 = vld [vmem:[%s2068_s8] sm:$0xf] }
 0x3c7   : > { %v780_v17 = vperm.slane %v778_v16, 0  ;;  %v783_v18 = vperm.slane %v778_v16, 3  ;;  %v781_v24 = vperm.slane %v778_v16, 1  ;;  %v782_v26 = vperm.slane %v778_v16, 2 }
 0x3c8   : > { %v608_v43 = vpack.c.bf16 %v607_v42, %v607_v42  ;;  %876 = vmatpush.bf16.msrb.mxu0 %v1343_v20  ;;  %v1521_v42 = vld [vmem:[%s2069_s9 + $0xe8] sm:$0xff] }
 0x3c9   : > { %1178 = vmatpush.bf16.msra.mxu2 %v1514_v40 }
 0x3ca   : > { %1300 = vmatmul.msk.bf16.vlgmr.msrb.gmra.mxu1 %vm461_vm5, %v608_v43  ;;  %v1505_v43 = vld [vmem:[%s2069_s9 + $0x68] sm:$0xff] }
 0x3cb   : > { %1151 = vmatpush.bf16.msrb.mxu1 %v1499_v32 }
 0x3cc   : > { %877 = vmatpush.bf16.msrb.mxu0 %v1327_v30 }
 0x3cf   : > { %1152 = vmatpush.bf16.msrb.mxu1 %v1498_v37 }
 0x3d3   : > { %1153 = vmatpush.bf16.msrb.mxu1 %v1497_v41 }
 0x427   : > { %v512_v44 = vpop.f32.mrf.mxu2 }
 0x42f   : > { %v514_v45 = vpop.f32.mrf.mxu2 }
 0x430   : > { %v1496_v45 = vld [vmem:[%s2069_s9 + $0x20] sm:$0xff] }
 0x431   : > { %1154 = vmatpush.bf16.msrb.mxu1 %v1496_v45 }
 0x435   : > { %1155 = vmatpush.bf16.msrb.mxu1 %v1495_v52 }
 0x437   : > { %v569_v46 = vpop.f32.mrf.mxu2 }
 0x438   : > { %688 = vrot.lane.b32.xlu1 %v569_v46, %s1681_s14  ;;  %v1520_v46 = vld [vmem:[%s2069_s9 + $0xe0] sm:$0xff]  ;;  %s1619_s14 = sshra.s32 %s1221_s13, 4  ;;  %s1620_s14 = int_to_ptr.hbm [resolvable:$true] %s1619_s14 }
 0x439   : > { %p1626_p0 = scmp.lt.s32.totalorder %s1620_s14, %s2071_s11 }
 0x43f   : > { %v571_v47 = vpop.f32.mrf.mxu2 }
 0x447   : > { %v626_v48 = vpop.f32.mrf.mxu1  ;;  %v683_v49 = vpop.f32.mrf.mxu2 }
 0x448   : > { %692 = vrot.lane.b32.xlu2 %v626_v48, %s1682_s15  ;;  %696 = vrot.lane.b32.xlu0 %v683_v49, %s1683_s16  ;;  %v1504_v48 = vld [vmem:[%s2069_s9 + $0x60] sm:$0xff]  ;;  %s375_s16 = sand.u32 1, %s1659_s18   ;;  %s1621_s15 = scalar_lea.hbm %s1620_s14, 8 }
 0x449   : > { %v1512_v49 = vld [vmem:[%s2069_s9 + $0xa0] sm:$0xff]  ;;  %s1284_s22 = sshll.u32 %s375_s16, 3  ;;  %s1206_s21 = scalar_lea.sflag [#allocation3], %s375_s16 }
 0x44a   : > { %s377_s30 = scalar_lea.vmem [#allocation2], %s1284_s22  ;;  %p1622_p11 = scmp.ne.s32.totalorder %s1620_s14, %s1621_s15 }
 0x44b   : > { %s1218_s12 = sshll.u32 %s377_s30, 4  ;;  %p1627_p1 = scmp.lt.s32.totalorder %s1625_s25, %s1621_s15  ;;  %s1219_s12 = int_to_ptr.vmem [resolvable:$true] %s1218_s12 }
 0x44c   : > { %p1623_p12 = pnand %p1622_p11, %p1782_p5 }
 0x44d   : > { %p1628_p2 = por %p1627_p1, %p1626_p0 }
 0x44e   : > { %p1624_p13 = pneg %p1623_p12 }
 0x44f   : > { %v628_v50 = vpop.f32.mrf.mxu1  ;;  %v685_v51 = vpop.f32.mrf.mxu2 }
 0x450   : > { %p1629_p3 = pnand %p1628_p2, %p1624_p13 }
 0x4a2   : > { %v693_v56 = vpop.permute.xlu2 %692 }
 0x4aa   : > { %v689_v54 = vpop.permute.xlu1 %688 }
 0x4ab   : > { %v699_v55 = vsel %vm461_vm5, %v512_v44, %v689_v54  ;;  %v1513_v44 = vld [vmem:[%s2069_s9 + $0xa8] sm:$0xff]  ;;  %v1503_v54 = vld [vmem:[%s2069_s9 + $0x58] sm:$0xff] }
 0x4ac   : > { %v701_v58 = vsel %vm700_vm7, %v699_v55, %v693_v56  ;;  %1179 = vmatpush.bf16.msra.mxu2 %v1513_v44  ;;  %v1511_v55 = vld [vmem:[%s2069_s9 + $0x98] sm:$0xff] }
 0x4b0   : > { %1180 = vmatpush.bf16.msra.mxu2 %v1512_v49 }
 0x4b4   : > { %1181 = vmatpush.bf16.msra.mxu2 %v1511_v55 }
 0x4b8   : > { %1182 = vmatpush.bf16.msra.mxu2 %v1510_v9 }
 0x4ba   : > { %v697_v57 = vpop.permute.xlu0 %696 }
 0x4bb   : > { %v703_v59 = vsel %vm702_vm8, %v701_v58, %v697_v57  ;;  %v1494_v58 = vld [vmem:[%s2069_s9 + $0x10] sm:$0xff] }
 0x4bc   : > { %v704_v60 = vpack.c.bf16 %v703_v59, %v703_v59  ;;  %v1518_v59 = vld [vmem:[%s2069_s9 + $0xd0] sm:$0xff]  ;;  %1156 = vmatpush.bf16.msrb.mxu1 %v1494_v58  ;;  %1183 = vmatpush.bf16.msra.mxu2 %v1509_v13 }
 0x4be   : > { %1311 = vmatmul.msk.bf16.vlgmr.msra.gmra.mxu0 %vm386_vm0, %v704_v60 }
 0x4bf   : > { %1190 = vmatpush.bf16.msra.mxu0 %v1523_v33 }
 0x4c0   : > { %1184 = vmatpush.bf16.msra.mxu2 %v1508_v15 }
 0x4c3   : > { %1191 = vmatpush.bf16.msra.mxu0 %v1522_v38 }
 0x4c7   : > { %1192 = vmatpush.bf16.msra.mxu0 %v1521_v42  ;;  %v1582_v42 = vld [vmem:[%s2070_s10] ss:$0 sm:$0xff] }
 0x4cb   : > { %1193 = vmatpush.bf16.msra.mxu0 %v1520_v46 }
 0x4cf   : > { %1194 = vmatpush.bf16.msra.mxu0 %v1519_v53 }
 0x4d3   : > { %1195 = vmatpush.bf16.msra.mxu0 %v1518_v59 }
 0x53b   : > { %v733_v61 = vpop.f32.mrf.mxu0 }
 0x53c   : > { %v1853_v62 = vadd.f32 %v733_v61, %v1797_v0  ;;  %v1488_v0 = vld [vmem:[%s2067_s7 + $0x24] sm:$0xf]  ;;  %v1580_v61 = vld [vmem:[%s2065_s5] ss:$0 sm:$0xff] }
 0x53d   : > { %v1335_v10 = vor.u32 %v1488_v0, %v1332_v7  ;;  %v1493_v0 = vld [vmem:[%s2069_s9 + $0x8] sm:$0xff]  ;;  %v1502_v7 = vld [vmem:[%s2069_s9 + $0x50] sm:$0xff] }
 0x53e   : > { %v739_v63 = vsel %vm386_vm0, %v1853_v62, 0.0  ;;  %1157 = vmatpush.bf16.msrb.mxu1 %v1493_v0 }
 0x53f   : > { %740 = vadd.xlane.f32.xlu2 %v739_v63  ;;  %850 = vmatpush.bf16.msra.mxu3 %v1335_v10  ;;  %v1492_v10 = vld [vmem:[%s2069_s9] sm:$0xff] }
 0x542   : > { %1158 = vmatpush.bf16.msrb.mxu1 %v1492_v10 }
 0x543   : > { %v735_v1 = vpop.f32.mrf.mxu0  ;;  %851 = vmatpush.bf16.msra.mxu3 %v1319_v22 }
 0x547   : > { %1164 = vmatpush.bf16.msrb.mxu3 %v1507_v35 }
 0x5b2   : > { %v741_v2 = vpop.xlane.xlu2 %740 }
 0x5b3   : > { %v742_v3 = vmul.f32 %v741_v2, %v1801_v8  ;;  %v1581_v2 = vld [vmem:[%s2066_s6] ss:$0 sm:$0xff] }
 0x5b5   : > { %v1859_v4 = vsub.f32 %v1853_v62, %v742_v3 }
 0x5b7   : > { %v744_v5 = vmul.f32 %v1859_v4, %v1859_v4 }
 0x5b9   : > { %v745_v6 = vsel %vm386_vm0, %v744_v5, 0.0 }
 0x5ba   : > { %746 = vadd.xlane.f32.xlu0 %v745_v6 }
 0x62d   : > { %v747_v31 = vpop.xlane.xlu0 %746 }
 0x62e   : > { %v748_v34 = vmul.f32 %v747_v31, %v1801_v8  ;;  %v1506_v8 = vld [vmem:[%s2069_s9 + $0x70] sm:$0xff] }
 0x62f   : > { %1165 = vmatpush.bf16.msrb.mxu3 %v1506_v8 }
 0x630   : > { %v749_v39 = vadd.f32 1e-05, %v748_v34 }
 0x632   : > { %1603 = vrsqrt.f32 %v749_v39  ;;  %vm756_vm10 = vweird.f32 %v749_v39 }
 0x633   : > { %1166 = vmatpush.bf16.msrb.mxu3 %v1505_v43 }
 0x637   : > { %1167 = vmatpush.bf16.msrb.mxu3 %v1504_v48 }
 0x638   : > { %v1604_v47 = vpop.eup %1603 }
 0x639   : > { %v751_v50 = vmul.f32 %v1604_v47, %v749_v39  ;;  %vm757_vm9 = vweird.f32 %v1604_v47 }
 0x63a   : > { %vm758_vm11 = vmor %vm756_vm10, %vm757_vm9 }
 0x63b   : > { %v752_v51 = vmul.f32 %v1604_v47, %v751_v50  ;;  %1168 = vmatpush.bf16.msrb.mxu3 %v1503_v54 }
 0x63d   : > { %v753_v56 = vmul.f32 0.5, %v752_v51 }
 0x63f   : > { %v754_v57 = vsub.f32 1.5, %v753_v56  ;;  %1169 = vmatpush.bf16.msrb.mxu3 %v1502_v7 }
 0x641   : > { %v755_v60 = vmul.f32 %v1604_v47, %v754_v57 }
 0x643   : > { %v759_v63 = vsel %vm758_vm11, %v1604_v47, %v755_v60  ;;  %1170 = vmatpush.bf16.msrb.mxu3 %v1501_v12 }
 0x644   : > { %v760_v1 = vmul.f32 %v759_v63, %v1859_v4  ;;  %v1517_v4 = vld [vmem:[%s2069_s9 + $0xc8] sm:$0xff] }
 0x645   : > { %1196 = vmatpush.bf16.msra.mxu0 %v1517_v4 }
 0x646   : > { %v764_v3 = vmul.f32 %v1580_v61, %v760_v1 }
 0x647   : > { %1171 = vmatpush.bf16.msrb.mxu3 %v1500_v14 }
 0x648   : > { %v768_v5 = vadd.f32 %v1581_v2, %v764_v3 }
 0x649   : > { %1197 = vmatpush.bf16.msra.mxu0 %v1516_v11 }
 0x64a   : > { %v769_v6 = vpack.c.bf16 %v768_v5, %v768_v5 }
 0x64c   : > { %1344 = vmatmul.msk.bf16.vlgmr.msra.gmra.mxu1 %vm386_vm0, %v769_v6  ;;  %1345 = vmatmul.msk.bf16.vlgmr.msra.gmra.mxu3 %vm386_vm0, %v769_v6 }
 0x64d   : > { %1346 = vmatmul.msk.bf16.vlgmr.msrb.gmra.mxu2 %vm386_vm0, %v769_v6  ;;  %1347 = vmatmul.msk.bf16.vlgmr.msrb.gmra.mxu0 %vm386_vm0, %v769_v6 }
 0x6c9   : > { %v840_v19 = vpop.f32.mrf.mxu1 }
 0x6ca   : > { %v841_v20 = vadd.f32 %v840_v19, %v780_v17  ;;  %v879_v21 = vpop.f32.mrf.mxu0 }
 0x6cb   : > { %v880_v22 = vadd.f32 %v879_v21, %v783_v18 }
 0x6cc   : > { %v883_v23 = vmax.f32 %v841_v20, 0.0 }
 0x6cd   : > { %v886_v25 = vmax.f32 %v880_v22, 0.0 }
 0x6ce   : > { %v887_v27 = vpack.c.bf16 %v883_v23, %v883_v23 }
 0x6cf   : > { %v890_v28 = vpack.c.bf16 %v886_v25, %v886_v25  ;;  %v853_v29 = vpop.f32.mrf.mxu3 }
 0x6d0   : > { %v854_v30 = vadd.f32 %v853_v29, %v781_v24  ;;  %v866_v31 = vpop.f32.mrf.mxu2  ;;  %1159 = vmatmul.bf16.vlgmr.msrb.gmra.mxu1 %v887_v27 }
 0x6d1   : > { %v867_v32 = vadd.f32 %v866_v31, %v782_v26  ;;  %1198 = vmatmul.bf16.vlgmr.msra.gmra.mxu0 %v890_v28  ;;  %v842_v33 = vpop.f32.mrf.mxu1 }
 0x6d2   : > { %v884_v34 = vmax.f32 %v854_v30, 0.0  ;;  %v881_v35 = vpop.f32.mrf.mxu0 }
 0x6d3   : > { %v885_v36 = vmax.f32 %v867_v32, 0.0 }
 0x6d4   : > { %v888_v37 = vpack.c.bf16 %v884_v34, %v884_v34 }
 0x6d5   : > { %v889_v38 = vpack.c.bf16 %v885_v36, %v885_v36 }
 0x6d6   : > { %1172 = vmatmul.bf16.vlgmr.msrb.gmra.mxu3 %v888_v37 }
 0x6d7   : > { %1185 = vmatmul.bf16.vlgmr.msra.gmra.mxu2 %v889_v38  ;;  %v855_v39 = vpop.f32.mrf.mxu3 }
 0x6d8   : > { %v868_v8 = vpop.f32.mrf.mxu2 }
 0x74d   : > { %v1160_v40 = vpop.f32.mrf.mxu1 }
 0x74e   : > { %v1199_v41 = vpop.f32.mrf.mxu0  ;;  %v1161_v45 = vadd.f32 %v1582_v42, %v1160_v40 }
 0x755   : > { %v1162_v43 = vpop.f32.mrf.mxu1 }
 0x756   : > { %v1201_v44 = vpop.f32.mrf.mxu0 }
 0x759   : > { %v1173_v46 = vpop.f32.mrf.mxu3 }
 0x75a   : > { %v1174_v47 = vadd.f32 %v1173_v46, %v1161_v45  ;;  %v1186_v48 = vpop.f32.mrf.mxu2 }
 0x75c   : > { %v1187_v49 = vadd.f32 %v1186_v48, %v1174_v47 }
 0x75e   : > { %v1200_v50 = vadd.f32 %v1199_v41, %v1187_v49 }
 0x760   : > { %v1203_v51 = vadd.f32 %v1200_v50, %v1853_v62 }
 0x761   : > { %v1175_v52 = vpop.f32.mrf.mxu3 }
 0x762   : > { %v1188_v53 = vpop.f32.mrf.mxu2  ;;  %1204 = vst.msk [vmem:[%s377_s30] sm:$0xff] %vm386_vm0, %v1203_v51 }
 0x763   : > { %1632 = shalt.err (!%p1629_p3)
}
 0x764   : > { %1524 = dma.vmem_to_hbm [thread:$0]  (%p1782_p5), %s1219_s12, 128, %s1221_s13, %s1206_s21  }
 0x765 PF: > { %p1530_p4 = scmp.ge.s32.totalorder %s1667_s20, 2  ;;  %s1232_s16 = sand.u32 1, %s1655_s17  }
 0x766   : > { %s1233_s30 = scalar_lea.sflag [#allocation3], %s1232_s16 }
 0x767   : > { %p1527_p7 = pnand %p1530_p4, %p1786_p6 }
 0x769   : > { %p1528_p8 = pneg %p1527_p7 }
 0x76b   : > { %1650 = dma.done.wait (%p1528_p8), %s1233_s30, 128  }
 0x76c   : > { %1652 = vsyncadd (%p1528_p8), %s1233_s30, 4294967168  ;;  %p21_p9 = scmp.ge.s32.totalorder %s1769_s23, 4   ;;  %s2076_s17 = smov %s1659_s18 }
 0x76d   : > { %s2077_s18 = smov %s1663_s19  ;;  %s2078_s19 = smov %s1780_s26 }
 0x76e   : > { %s2079_s20 = smov %s1769_s23  ;;  %23 = sbr.rel (!%p21_p9) target bundleno = 5 (0x5), region = 99 }
 0x773   :  { %1239 = vsyncpa [#allocation3], 1 }
 0x774   :  { %1241 = vsyncpa [#allocation3 + $0x1], 1 }

</bundles_post_ra>
